<compile_context>
chip_gen: v6e
topology: v6e:2x2x1
jax: 0.10.0
libtpu: 0.0.40
codegen_flags: <defaults>
</compile_context>

<pallas_src>
import functools

import jax
import jax.numpy as jnp
from jax.experimental import pallas as pl
from jax.experimental.pallas import tpu as pltpu


_LANE = 128


def _cdiv(a, b):
    return -(-a // b)


# ---------------------------------------------------------------------------
# Kernels
# ---------------------------------------------------------------------------

def _fused_kernel(x_ref, w1t_ref, w2t_ref, o_ref, *, inv_l):
    """Single pass: pool + squeeze-excite MLP + scale for one batch tile."""
    bt, C, L = x_ref.shape
    nfull = L // _LANE
    rem = L - nfull * _LANE

    # Two-stage reduce: VPU-accumulate 128-lane slices, one cross-lane sum at the end.
    pooled = jnp.zeros((bt, C), jnp.float32)
    if nfull > 0:
        part = jnp.zeros((bt, C, _LANE), jnp.float32)
        for k in range(nfull):
            part = part + x_ref[:, :, k * _LANE:(k + 1) * _LANE].astype(jnp.float32)
        pooled = pooled + jnp.sum(part, axis=2)
    if rem > 0:
        pooled = pooled + jnp.sum(
            x_ref[:, :, nfull * _LANE:].astype(jnp.float32), axis=2)
    pooled = pooled * inv_l                                     # mean as sum * (1/L)

    h = jnp.maximum(
        jnp.dot(pooled, w1t_ref[...], preferred_element_type=jnp.float32), 0.0)
    y = jax.nn.sigmoid(
        jnp.dot(h, w2t_ref[...], preferred_element_type=jnp.float32))
    y = y.astype(o_ref.dtype)
    o_ref[...] = x_ref[...] * y[:, :, None]                    # native-dtype multiply


def _gains_kernel(x_ref, w1t_ref, w2t_ref, y_ref, acc_ref, *, inv_l, true_l, lt, nl):
    """Pass 1 of the L-tiled path: VPU-accumulate channel sums, finalize gains."""
    li = pl.program_id(1)
    bt, C, _ = x_ref.shape

    @pl.when(li == 0)
    def _():
        acc_ref[...] = jnp.zeros_like(acc_ref)

    last_tile_valid = true_l - (nl - 1) * lt            # static, in (0, lt]
    ragged = last_tile_valid < lt                       # static python bool

    def partial_sum(valid_len):
        """Sum the first `valid_len` (static) samples of this tile into (bt, C, 128)."""
        part = jnp.zeros((bt, C, _LANE), jnp.float32)
        for k in range(lt // _LANE):
            start = k * _LANE
            if start >= valid_len:
                break
            chunk = x_ref[:, :, start:start + _LANE].astype(jnp.float32)
            width = valid_len - start
            if width < _LANE:
                lane = jax.lax.broadcasted_iota(jnp.int32, (bt, C, _LANE), 2)
                chunk = jnp.where(lane < width, chunk, 0.0)
            part = part + chunk
        return part

    if ragged:
        @pl.when(li < nl - 1)
        def _():
            acc_ref[...] += partial_sum(lt)

        @pl.when(li == nl - 1)
        def _():
            acc_ref[...] += partial_sum(last_tile_valid)
    else:
        acc_ref[...] += partial_sum(lt)

    @pl.when(li == nl - 1)
    def _():
        pooled = jnp.sum(acc_ref[...], axis=2) * inv_l          # single cross-lane reduce
        h = jnp.maximum(
            jnp.dot(pooled, w1t_ref[...], preferred_element_type=jnp.float32), 0.0)
        y = jax.nn.sigmoid(
            jnp.dot(h, w2t_ref[...], preferred_element_type=jnp.float32))
        y_ref[...] = y[None, :, :].astype(y_ref.dtype)          # (1, bt, C), lane-dense


def _scale_kernel(y_ref, x_ref, o_ref):
    """Pass 2 of the L-tiled path: broadcast-scale one (bt, C, Lt) tile, no casting."""
    y = y_ref[0]                                 # (bt, C), already x.dtype
    o_ref[...] = x_ref[...] * y[:, :, None]


# ---------------------------------------------------------------------------
# Generation-aware sizing
# ---------------------------------------------------------------------------

def _vmem_budget():
    """Returns (block_bytes_budget, vmem_limit_bytes), derived per TPU generation."""
    try:
        cap = int(pltpu.get_tpu_info().vmem_capacity_bytes)
    except Exception:
        cap = 64 * 1024 * 1024        # conservative: smallest per-core VMEM (v7x)
    # Leave headroom for Mosaic-internal scratch; never ask for more than 96 MiB.
    vmem_limit = min(int(cap * 3) // 4, 96 * 1024 * 1024)
    # 2x input + 2x output double buffers + f32 accumulators/slack ~ 6x one block.
    block_budget = vmem_limit // 6
    return block_budget, vmem_limit


def _num_tensorcores():
    try:
        kind = jax.devices()[0].device_kind.lower()
    except Exception:
        return 1
    return 2 if ("v7" in kind or "7x" in kind) else 1


# ---------------------------------------------------------------------------
# Wrapper
# ---------------------------------------------------------------------------

def channel_attention(x, w1, w2, *, block_bytes_budget=None, vmem_limit_bytes=None):
    """x: (B, C, L); w1: (H, C); w2: (C, H).  Returns (B, C, L)."""
    B, C, L = x.shape
    H = w1.shape[0]
    assert w1.shape == (H, C) and w2.shape == (C, H)

    auto_budget, auto_limit = _vmem_budget()
    if block_bytes_budget is None:
        block_bytes_budget = auto_budget
    if vmem_limit_bytes is None:
        vmem_limit_bytes = auto_limit
    n_tc = _num_tensorcores()

    w1t = jnp.asarray(w1).T            # (C, H), stays resident
    w2t = jnp.asarray(w2).T            # (H, C), stays resident
    inv_l = 1.0 / float(L)
    itemsize = jnp.dtype(x.dtype).itemsize

    def compiler(sem):
        return pltpu.CompilerParams(
            dimension_semantics=sem, vmem_limit_bytes=int(vmem_limit_bytes))

    row_bytes = C * L * itemsize
    max_fused_chunks = 256             # bound trace/compile-time unroll of the reducer
    use_fused = (row_bytes <= block_bytes_budget) and (L <= max_fused_chunks * _LANE)
    # On 2-TC chips with fewer batch rows than cores, a 1-step fused grid idles a core;
    # the two-pass path gives a parallel L axis in the bandwidth-dominant scale pass.
    if (use_fused and n_tc >= 2 and B < n_tc
            and L >= 2 * _LANE and row_bytes >= (1 << 20)):
        use_fused = False

    if use_fused:
        # ---------------- fused single pass: whole L per block, tile batch --------
        bt = max(1, min(B, block_bytes_budget // max(row_bytes, 1)))
        if n_tc >= 2 and B > 1:                  # only split for real multi-core chips
            bt = min(bt, _cdiv(B, n_tc))
        bt = int(bt)
        nb = _cdiv(B, bt)

        return pl.pallas_call(
            functools.partial(_fused_kernel, inv_l=inv_l),
            out_shape=jax.ShapeDtypeStruct((B, C, L), x.dtype),
            grid_spec=pltpu.PrefetchScalarGridSpec(
                num_scalar_prefetch=0,
                grid=(nb,),
                in_specs=[
                    pl.BlockSpec((bt, C, L), lambda b: (b, 0, 0)),
                    pl.BlockSpec((C, H), lambda b: (0, 0)),
                    pl.BlockSpec((H, C), lambda b: (0, 0)),
                ],
                out_specs=pl.BlockSpec((bt, C, L), lambda b: (b, 0, 0)),
            ),
            compiler_params=compiler(("parallel",)),
        )(x, w1t, w2t)

    # ---------------- large C*L: two streaming passes over L tiles ----------------
    max_lt = 64 * _LANE                          # bound in-kernel static unroll
    lt = (block_bytes_budget // (C * itemsize)) // _LANE * _LANE
    lt = int(max(_LANE, min(lt, max_lt, _cdiv(L, _LANE) * _LANE)))
    if n_tc >= 2 and B < n_tc:                   # make sure nl >= n_tc when B can't split
        lt = int(max(_LANE, min(lt, _cdiv(_cdiv(L, n_tc), _LANE) * _LANE)))
    bt = int(max(1, min(B, block_bytes_budget // (C * lt * itemsize))))
    if n_tc >= 2 and B > 1:
        bt = min(bt, _cdiv(B, n_tc))
    bt = int(bt)
    nb = _cdiv(B, bt)
    nl = _cdiv(L, lt)

    # Pass 1: running channel sums (f32 (bt,C,128) VMEM scratch) -> gains (nb, bt, C).
    gains = pl.pallas_call(
        functools.partial(_gains_kernel, inv_l=inv_l, true_l=L, lt=lt, nl=nl),
        out_shape=jax.ShapeDtypeStruct((nb, bt, C), x.dtype),
        grid_spec=pltpu.PrefetchScalarGridSpec(
            num_scalar_prefetch=0,
            grid=(nb, nl),
            in_specs=[
                pl.BlockSpec((bt, C, lt), lambda b, l: (b, 0, l)),
                pl.BlockSpec((C, H), lambda b, l: (0, 0)),
                pl.BlockSpec((H, C), lambda b, l: (0, 0)),
            ],
            out_specs=pl.BlockSpec((1, bt, C), lambda b, l: (b, 0, 0)),
            scratch_shapes=[pltpu.VMEM((bt, C, _LANE), jnp.float32)],
        ),
        compiler_params=compiler(("parallel", "arbitrary")),
    )(x, w1t, w2t)

    # Pass 2: stream x tiles and scale by the per-(batch, channel) gain.
    out = pl.pallas_call(
        _scale_kernel,
        out_shape=jax.ShapeDtypeStruct((B, C, L), x.dtype),
        grid_spec=pltpu.PrefetchScalarGridSpec(
            num_scalar_prefetch=0,
            grid=(nb, nl),
            in_specs=[
                pl.BlockSpec((1, bt, C), lambda b, l: (b, 0, 0)),
                pl.BlockSpec((bt, C, lt), lambda b, l: (b, 0, l)),
            ],
            out_specs=pl.BlockSpec((bt, C, lt), lambda b, l: (b, 0, l)),
        ),
        compiler_params=compiler(("parallel", "parallel")),
    )(gains, x)
    return out


# ---------------------------------------------------------------------------
# Pure-JAX reference
# ---------------------------------------------------------------------------

def channel_attention_ref(x, w1, w2):
    y = jnp.mean(x, axis=-1)                 # (B, C)
    y = jnp.maximum(y @ w1.T, 0.0)           # (B, H)
    y = jax.nn.sigmoid(y @ w2.T)             # (B, C)
    return x * y[:, :, None]


if __name__ == "__main__":
    C = 32
    reduction = 16
    H = C // reduction

    key = jax.random.PRNGKey(0)
    kx, kx2, kx3, kx4, k1, k2 = jax.random.split(key, 6)

    w1 = jax.random.uniform(k1, (H, C), dtype=jnp.float32,
                            minval=-1.0, maxval=1.0) * (1.0 / jnp.sqrt(C))
    w2 = jax.random.uniform(k2, (C, H), dtype=jnp.float32,
                            minval=-1.0, maxval=1.0) * (1.0 / jnp.sqrt(H))

    # 1) Small demo shape -> fused single-pass path.
    x1 = jax.random.normal(kx, (2, C, 128), dtype=jnp.float32)
    out1 = jax.block_until_ready(channel_attention(x1, w1, w2))
    ref1 = channel_attention_ref(x1, w1, w2)
    assert out1.shape == x1.shape
    assert jnp.max(jnp.abs(out1 - ref1)) < 1e-5

    # 2) Force the L-tiled two-pass path (tiny budget -> lt=128, 3 aligned L tiles).
    x2 = jax.random.normal(kx2, (2, C, 384), dtype=jnp.float32)
    out2 = jax.block_until_ready(
        channel_attention(x2, w1, w2, block_bytes_budget=16 * 1024))
    ref2 = channel_attention_ref(x2, w1, w2)
    assert out2.shape == x2.shape
    assert jnp.max(jnp.abs(out2 - ref2)) < 1e-5

    # 3) Ragged batch / ragged L on the fused path (no wrapper pad/slice anymore).
    x3 = jax.random.normal(kx3, (3, C, 100), dtype=jnp.float32)
    out3 = jax.block_until_ready(channel_attention(x3, w1, w2))
    ref3 = channel_attention_ref(x3, w1, w2)
    assert out3.shape == x3.shape
    assert jnp.max(jnp.abs(out3 - ref3)) < 1e-5

    # 4) Ragged L + ragged batch on the two-pass path (exercises the masked last tile).
    x4 = jax.random.normal(kx4, (3, C, 300), dtype=jnp.float32)
    out4 = jax.block_until_ready(
        channel_attention(x4, w1, w2, block_bytes_budget=32 * 1024))
    ref4 = channel_attention_ref(x4, w1, w2)
    assert out4.shape == x4.shape
    assert jnp.max(jnp.abs(out4 - ref4)) < 1e-5

    print("KERNEL_OK")
</pallas_src>

<mosaic_0001>
module attributes {stable_mosaic.version = 11 : i64} {
  func.func @_fused_kernel(%arg0: i32, %arg1: memref<2x32x128xf32, #tpu.memory_space<vmem>>, %arg2: memref<32x2xf32, #tpu.memory_space<vmem>>, %arg3: memref<2x32xf32, #tpu.memory_space<vmem>>, %arg4: memref<2x32x128xf32, #tpu.memory_space<vmem>>) attributes {dimension_semantics = [#tpu.dimension_semantics<parallel>], iteration_bounds = array<i64: 1>, scalar_prefetch = 0 : i64, scratch_operands = 0 : i64, tpu.core_type = #tpu.core_type<tc>, window_params = [{transform_indices = @transform_0, window_bounds = array<i64: 2, 32, 128>}, {pipeline_mode = #tpu.pipeline_mode<synchronous>, transform_indices = @transform_1, window_bounds = array<i64: 32, 2>}, {pipeline_mode = #tpu.pipeline_mode<synchronous>, transform_indices = @transform_2, window_bounds = array<i64: 2, 32>}, {transform_indices = @transform_3, window_bounds = array<i64: 2, 32, 128>}]} {
    %cst = arith.constant 0.000000e+00 : f32
    %0 = vector.broadcast %cst : f32 to vector<2x32xf32>
    %cst_0 = arith.constant 0.000000e+00 : f32
    %1 = vector.broadcast %cst_0 : f32 to vector<2x32x128xf32>
    %c0 = arith.constant 0 : index
    %c0_1 = arith.constant 0 : index
    %c0_2 = arith.constant 0 : index
    %2 = vector.load %arg1[%c0, %c0_1, %c0_2] : memref<2x32x128xf32, #tpu.memory_space<vmem>>, vector<2x32x128xf32>
    %3 = arith.addf %1, %2 : vector<2x32x128xf32>
    %cst_3 = arith.constant dense<0.000000e+00> : vector<2x32xf32>
    %4 = vector.multi_reduction <add>, %3, %cst_3 [2] : vector<2x32x128xf32> to vector<2x32xf32>
    %5 = arith.addf %0, %4 : vector<2x32xf32>
    %cst_4 = arith.constant 7.812500e-03 : f32
    %6 = vector.broadcast %cst_4 : f32 to vector<2x32xf32>
    %7 = arith.mulf %5, %6 : vector<2x32xf32>
    %c0_5 = arith.constant 0 : index
    %c0_6 = arith.constant 0 : index
    %8 = vector.load %arg2[%c0_5, %c0_6] : memref<32x2xf32, #tpu.memory_space<vmem>>, vector<32x2xf32>
    %cst_7 = arith.constant dense<0.000000e+00> : vector<2x2xf32>
    %9 = tpu.matmul %7, %8, %cst_7 {dimension_numbers = #tpu.dot_dimension_numbers<[1], [0], [0], [1], [0, 0, 1, 1], [], []>} : vector<2x32xf32>, vector<32x2xf32>, vector<2x2xf32> -> vector<2x2xf32>
    %cst_8 = arith.constant 0.000000e+00 : f32
    %10 = vector.broadcast %cst_8 : f32 to vector<2x2xf32>
    %11 = arith.maximumf %9, %10 : vector<2x2xf32>
    %c0_9 = arith.constant 0 : index
    %c0_10 = arith.constant 0 : index
    %12 = vector.load %arg3[%c0_9, %c0_10] : memref<2x32xf32, #tpu.memory_space<vmem>>, vector<2x32xf32>
    %cst_11 = arith.constant dense<0.000000e+00> : vector<2x32xf32>
    %13 = tpu.matmul %11, %12, %cst_11 {dimension_numbers = #tpu.dot_dimension_numbers<[1], [0], [0], [1], [0, 0, 1, 1], [], []>} : vector<2x2xf32>, vector<2x32xf32>, vector<2x32xf32> -> vector<2x32xf32>
    %14 = arith.negf %13 : vector<2x32xf32>
    %15 = math.exp %14 : vector<2x32xf32>
    %cst_12 = arith.constant 1.000000e+00 : f32
    %16 = vector.broadcast %cst_12 : f32 to vector<2x32xf32>
    %17 = arith.addf %16, %15 : vector<2x32xf32>
    %18 = arith.divf %16, %17 : vector<2x32xf32>
    %c0_13 = arith.constant 0 : index
    %c0_14 = arith.constant 0 : index
    %c0_15 = arith.constant 0 : index
    %19 = vector.load %arg1[%c0_13, %c0_14, %c0_15] : memref<2x32x128xf32, #tpu.memory_space<vmem>>, vector<2x32x128xf32>
    %20 = vector.shape_cast %18 : vector<2x32xf32> to vector<2x32x1xf32>
    %21 = vector.broadcast %20 : vector<2x32x1xf32> to vector<2x32x128xf32>
    %22 = arith.mulf %19, %21 : vector<2x32x128xf32>
    %c0_16 = arith.constant 0 : index
    %c0_17 = arith.constant 0 : index
    %c0_18 = arith.constant 0 : index
    %23 = vector.load %arg4[%c0_16, %c0_17, %c0_18] : memref<2x32x128xf32, #tpu.memory_space<vmem>>, vector<2x32x128xf32>
    tpu.vector_store %arg4[%c0_16, %c0_17, %c0_18], %22 {strides = array<i32>} : memref<2x32x128xf32, #tpu.memory_space<vmem>>, vector<2x32x128xf32>,
    return
  }
  func.func @transform_0(%arg0: i32) -> (i32, i32, i32) {
    %c0_i32 = arith.constant 0 : i32
    %c0_i32_0 = arith.constant 0 : i32
    %c0_i32_1 = arith.constant 0 : i32
    return %arg0, %c0_i32, %c0_i32_0 : i32, i32, i32
  }
  func.func @transform_1(%arg0: i32) -> (i32, i32) {
    %c0_i32 = arith.constant 0 : i32
    %c0_i32_0 = arith.constant 0 : i32
    %c0_i32_1 = arith.constant 0 : i32
    return %c0_i32, %c0_i32_0 : i32, i32
  }
  func.func @transform_2(%arg0: i32) -> (i32, i32) {
    %c0_i32 = arith.constant 0 : i32
    %c0_i32_0 = arith.constant 0 : i32
    %c0_i32_1 = arith.constant 0 : i32
    return %c0_i32, %c0_i32_0 : i32, i32
  }
  func.func @transform_3(%arg0: i32) -> (i32, i32, i32) {
    %c0_i32 = arith.constant 0 : i32
    %c0_i32_0 = arith.constant 0 : i32
    %c0_i32_1 = arith.constant 0 : i32
    return %arg0, %c0_i32, %c0_i32_0 : i32, i32, i32
  }
}

</mosaic_0001>

<bundles_post_ra>
// kernel: tpu_custom_call.1
= control target key start
LH: loop header
LB: loop body
LE: loop exit
PB: predicated region body
PF: predicated region fallthrough
CT: control target
= control target key end

     0   :  { %8 = vsyncpa [#allocation3], 0  ;;  %s543_s0 = inlined_call_operand.hbm [shape: f32[2,32,128], index: 0, kind: input, shape index: {}]   ;;  %s544_s1 = inlined_call_operand.vmem [shape: f32[32,2], index: 1, kind: input, shape index: {}]   ;;  %s545_s2 = inlined_call_operand.vmem [shape: f32[2,32], index: 2, kind: input, shape index: {}]   ;;  %s546_s3 = inlined_call_operand.hbm [shape: f32[2,32,128], index: 3, kind: output, shape index: {}]  }
   0x1   :  { %9 = vsyncpa [#allocation4], 0  ;;  %s448_s12 = smov [#allocation2]  }
   0x2   :  { %s15_s13 = sshll.u32 %s448_s12, 4  ;;  %s16_s13 = int_to_ptr.vmem [resolvable:$true] %s15_s13 }
   0x3   :  { %s412_s14 = scalar_lea.vmem %s16_s13, 1024  ;;  %p417_p1 = scmp.lt.s32.totalorder %s16_s13, %s16_s13 }
   0x4   :  { %p413_p0 = scmp.ne.s32.totalorder %s16_s13, %s412_s14  ;;  %p418_p2 = scmp.lt.s32.totalorder %s412_s14, %s412_s14 }
   0x6   :  { %p419_p3 = por %p418_p2, %p417_p1 }
   0x8   :  { %p420_p4 = pnand %p419_p3, %p413_p0 }
   0xa   :  { %423 = shalt.err (!%p420_p4)
}
   0xb   :  { %s449_s15 = smov 128   ;;  %s450_s16 = smov 8  }
   0xc   :  { %21 = dma.hbm_to_vmem [thread:$0]  %s543_s0, 1024, %s16_s13, [#allocation3], %s449_s15, %s449_s15, %s450_s16  }
   0xd   :  { %444 = dma.done.wait [#allocation3], 1024  }
   0xe   :  { %445 = vsyncadd [#allocation3], 4294966272  ;;  %v480_v0 = vld [vmem:[#allocation2 + $0x20] sm:$0xff]  ;;  %v486_v2 = vld [vmem:[#allocation2 + $0x28] sm:$0xff]  ;;  %v451_v8 = vmov 0.0   ;;  %vm452_vm0 = vmmov 0   ;;  %v89_v13 = vlaneseq }
   0xf   :  { %v482_v1 = vld [vmem:[#allocation2] sm:$0xff]  ;;  %53 = vadd.xlane.f32.xlu1 %v480_v0  ;;  %v488_v3 = vld [vmem:[#allocation2 + $0x8] sm:$0xff]  ;;  %v492_v4 = vld [vmem:[#allocation2 + $0x30] sm:$0xff]  ;;  %378 = vmatprep.subr.mxu0 %v451_v8  ;;  %vm100_vm1 = vcmask 130112   ;;  %vm107_vm2 = vcmask 195712   ;;  %vm114_vm3 = vcmask 261312  }
  0x10   :  { %45 = vadd.xlane.f32.xlu0 %v482_v1  ;;  %v494_v5 = vld [vmem:[#allocation2 + $0x10] sm:$0xff]  ;;  %v498_v6 = vld [vmem:[#allocation2 + $0x38] sm:$0xff]  ;;  %389 = vmatprep.subr.mxu1 %v451_v8  ;;  %v78_v11 = vld [vmem:[%s544_s1 + $0x8] sm:$0xff]  ;;  %v90_v16 = vand.u32 127, %v89_v13  ;;  %v516_v18 = vshrl.u32 %v89_v13, 7  ;;  %vm135_vm4 = vcmask 1041409  }
  0x11   :  { %v500_v7 = vld [vmem:[#allocation2 + $0x18] sm:$0xff]  ;;  %v79_v10 = vld [vmem:[%s544_s1 + $0x10] sm:$0xff]  ;;  %v77_v12 = vld [vmem:[%s544_s1] sm:$0xff]  ;;  %386 = vmatprep.mubr.msk.f32.mxu0 %vm452_vm0, %v451_v8  ;;  %391 = vmatprep.mubr.msk.f32.mxu1 %vm452_vm0, %v451_v8  ;;  %vm137_vm5 = vcmask 261120   ;;  %vm216_vm6 = vcmask 1041408   ;;  %vm212_vm7 = vcmask 15360  }
  0x12   :  { %v80_v9 = vld [vmem:[%s544_s1 + $0x18] sm:$0xff]  ;;  %v95_v17 = vadd.s32 4294967288, %v90_v16  ;;  %v102_v21 = vadd.s32 4294967280, %v90_v16  ;;  %v109_v25 = vadd.s32 4294967272, %v90_v16  ;;  %v93_v26 = vsub.s32 %v90_v16, %v516_v18  ;;  %v211_v54 = vld [vmem:[%s545_s2] sm:$0x3] }
  0x13   :  { %55 = vadd.xlane.f32.xlu1 %v486_v2  ;;  %379 = vmatpush3.msra.mxu0 %v80_v9  ;;  %v298_v63 = vsub.s32 0, %v516_v18  ;;  %s453_s2 = smov [#allocation5]  }
  0x14   :  { %47 = vadd.xlane.f32.xlu0 %v488_v3  ;;  %380 = vmatprep.subr.mxu0 %v451_v8  ;;  %v98_v22 = vsub.s32 %v95_v17, %v516_v18  ;;  %v105_v27 = vsub.s32 %v102_v21, %v516_v18  ;;  %v112_v36 = vsub.s32 %v109_v25, %v516_v18  ;;  %s355_s27 = sshll.u32 %s453_s2, 4  ;;  %s356_s27 = int_to_ptr.vmem [resolvable:$true] %s355_s27 }
  0x15   :  { %381 = vmatpush3.msra.mxu0 %v79_v10  ;;  %390 = vmatpush3.msk.msra.mxu1 %vm216_vm6, %v211_v54  ;;  %v317_v10 = vsub.s32 1, %v516_v18  ;;  %s424_s28 = scalar_lea.vmem %s356_s27, 1024  ;;  %p429_p6 = scmp.lt.s32.totalorder %s356_s27, %s356_s27 }
  0x16   :  { %382 = vmatprep.subr.mxu0 %v451_v8  ;;  %p425_p5 = scmp.ne.s32.totalorder %s356_s27, %s424_s28  ;;  %p430_p7 = scmp.lt.s32.totalorder %s424_s28, %s424_s28 }
  0x17   :  { %57 = vadd.xlane.f32.xlu1 %v492_v4  ;;  %383 = vmatpush3.msra.mxu0 %v78_v11 }
  0x18   :  { %49 = vadd.xlane.f32.xlu0 %v494_v5  ;;  %384 = vmatprep.subr.mxu0 %v451_v8  ;;  %p431_p8 = por %p430_p7, %p429_p6 }
  0x19   :  { %385 = vmatpush3.msra.mxu0 %v77_v12 }
  0x1a   :  { %p432_p9 = pnand %p431_p8, %p425_p5 }
  0x1b   :  { %59 = vadd.xlane.f32.xlu1 %v498_v6 }
  0x1c   :  { %51 = vadd.xlane.f32.xlu0 %v500_v7 }
  0x98   :  { %v54_v14 = vpop.xlane.xlu1 %53 }
  0x99   :  { %v46_v15 = vpop.xlane.xlu0 %45  ;;  %v73_v30 = vmul.f32 0.0078125, %v54_v14 }
  0x9a   :  { %v69_v31 = vmul.f32 0.0078125, %v46_v15 }
  0x9b   :  { %v119_v41 = vrot.slane %v73_v30, %v93_v26 }
  0x9c   :  { %v56_v19 = vpop.xlane.xlu1 %55  ;;  %v94_v42 = vrot.slane %v69_v31, %v93_v26 }
  0x9d   :  { %v48_v20 = vpop.xlane.xlu0 %47  ;;  %v74_v23 = vmul.f32 0.0078125, %v56_v19 }
  0x9e   :  { %v70_v24 = vmul.f32 0.0078125, %v48_v20 }
  0x9f   :  { %v123_v34 = vrot.slane %v74_v23, %v98_v22 }
  0xa0   :  { %v58_v28 = vpop.xlane.xlu1 %57  ;;  %v99_v35 = vrot.slane %v70_v24, %v98_v22 }
  0xa1   :  { %v50_v29 = vpop.xlane.xlu0 %49  ;;  %v75_v32 = vmul.f32 0.0078125, %v58_v28  ;;  %v124_v45 = vsel %vm100_vm1, %v123_v34, %v119_v41 }
  0xa2   :  { %v71_v33 = vmul.f32 0.0078125, %v50_v29  ;;  %v101_v46 = vsel %vm100_vm1, %v99_v35, %v94_v42 }
  0xa3   :  { %v128_v37 = vrot.slane %v75_v32, %v105_v27 }
  0xa4   :  { %v106_v38 = vrot.slane %v71_v33, %v105_v27  ;;  %v60_v39 = vpop.xlane.xlu1 %59 }
  0xa5   :  { %v52_v40 = vpop.xlane.xlu0 %51  ;;  %v76_v43 = vmul.f32 0.0078125, %v60_v39  ;;  %v129_v49 = vsel %vm107_vm2, %v128_v37, %v124_v45 }
  0xa6   :  { %v72_v44 = vmul.f32 0.0078125, %v52_v40  ;;  %v108_v50 = vsel %vm107_vm2, %v106_v38, %v101_v46 }
  0xa7   :  { %v133_v47 = vrot.slane %v76_v43, %v112_v36 }
  0xa8   :  { %v113_v48 = vrot.slane %v72_v44, %v112_v36 }
  0xa9   :  { %v134_v52 = vsel %vm114_vm3, %v133_v47, %v129_v49 }
  0xaa   :  { %v115_v51 = vsel %vm114_vm3, %v113_v48, %v108_v50 }
  0xab   :  { %v136_v53 = vsel %vm135_vm4, %v134_v52, %v115_v51 }
  0xac   :  { %387 = vmatmul.mubr.msk.f32.vlgmr.msra.gmra.mxu0 %vm137_vm5, %v136_v53 }
 0x16c   :  { %v206_v55 = vpop.f32.mrf.mxu0 }
 0x16d   :  { %v210_v56 = vmax.f32 %v206_v55, 0.0 }
 0x16e   :  { %v388_v57 = vpop.f32.mrf.mxu0 }
 0x16f   :  { %392 = vmatmul.mubr.msk.f32.vlgmr.msra.gmra.mxu1 %vm212_vm7, %v210_v56 }
 0x22f   :  { %v286_v58 = vpop.f32.mrf.mxu1 }
 0x230   :  { %v370_v59 = vmul.f32 -1.442695, %v286_v58 }
 0x231   :  { %v393_v60 = vpop.f32.mrf.mxu1 }
 0x232   :  { %400 = vpow2.f32 %v370_v59 }
 0x23f   :  { %v401_v61 = vpop.eup %400 }
 0x240   :  { %v293_v62 = vadd.f32 1.0, %v401_v61 }
 0x242   :  { %402 = vrcp.f32 %v293_v62 }
 0x24f   :  { %v403_v8 = vpop.eup %402 }
 0x250   :  { %v299_v9 = vrot.slane %v403_v8, %v298_v63  ;;  %v318_v11 = vrot.slane %v403_v8, %v317_v10 }
 0x252   :  { %305 = vbcast.lane.b32.xlu1 %v299_v9, 264  ;;  %301 = vbcast.lane.b32.xlu0 %v299_v9, 256 }
 0x256   :  { %309 = vbcast.lane.b32.xlu1 %v299_v9, 272  ;;  %320 = vbcast.lane.b32.xlu0 %v318_v11, 256 }
 0x25a   :  { %313 = vbcast.lane.b32.xlu1 %v299_v9, 280  ;;  %328 = vbcast.lane.b32.xlu0 %v318_v11, 272 }
 0x25e   :  { %324 = vbcast.lane.b32.xlu1 %v318_v11, 264 }
 0x262   :  { %332 = vbcast.lane.b32.xlu1 %v318_v11, 280 }
 0x2c4   :  { %v306_v12 = vpop.permute.xlu1 %305  ;;  %v302_v13 = vpop.permute.xlu0 %301 }
 0x2c5   :  { %v335_v14 = vmul.f32 %v306_v12, %v488_v3  ;;  %v334_v15 = vmul.f32 %v302_v13, %v482_v1 }
 0x2c7   :  { %343 = vst [vmem:[#allocation5 + $0x8] sm:$0xff] %v335_v14  ;;  %342 = vst [vmem:[#allocation5] sm:$0xff] %v334_v15 }
 0x2c8   :  { %v310_v16 = vpop.permute.xlu1 %309  ;;  %v321_v17 = vpop.permute.xlu0 %320 }
 0x2c9   :  { %v336_v18 = vmul.f32 %v310_v16, %v494_v5  ;;  %v338_v19 = vmul.f32 %v321_v17, %v480_v0 }
 0x2cb   :  { %344 = vst [vmem:[#allocation5 + $0x10] sm:$0xff] %v336_v18  ;;  %346 = vst [vmem:[#allocation5 + $0x20] sm:$0xff] %v338_v19 }
 0x2cc   :  { %v314_v20 = vpop.permute.xlu1 %313  ;;  %v329_v21 = vpop.permute.xlu0 %328 }
 0x2cd   :  { %v337_v22 = vmul.f32 %v314_v20, %v500_v7  ;;  %v340_v23 = vmul.f32 %v329_v21, %v492_v4 }
 0x2cf   :  { %345 = vst [vmem:[#allocation5 + $0x18] sm:$0xff] %v337_v22  ;;  %348 = vst [vmem:[#allocation5 + $0x30] sm:$0xff] %v340_v23 }
 0x2d0   :  { %v325_v3 = vpop.permute.xlu1 %324 }
 0x2d1   :  { %v339_v1 = vmul.f32 %v325_v3, %v486_v2 }
 0x2d3   :  { %347 = vst [vmem:[#allocation5 + $0x28] sm:$0xff] %v339_v1 }
 0x2d4   :  { %v333_v24 = vpop.permute.xlu1 %332 }
 0x2d5   :  { %v341_v5 = vmul.f32 %v333_v24, %v498_v6 }
 0x2d7   :  { %349 = vst [vmem:[#allocation5 + $0x38] sm:$0xff] %v341_v5 }
 0x2d8   :  { %435 = shalt.err (!%p432_p9)
}
 0x2d9   :  { %361 = dma.vmem_to_hbm [thread:$0]  %s356_s27, 1024, %s546_s3, [#allocation4], %s449_s15, %s449_s15, %s450_s16  }
 0x2da   :  { %446 = dma.done.wait [#allocation4], 1024  }
 0x2db   :  { %447 = vsyncadd [#allocation4], 4294966272 }
 0x2dc   :  { %365 = vsyncpa [#allocation3], 1 }
 0x2dd   :  { %366 = vsyncpa [#allocation4], 1 }

</bundles_post_ra>
